<compile_context>
chip_gen: v5e
topology: v5e:2x2
jax: 0.10.0
libtpu: 0.0.40
codegen_flags: <defaults>
</compile_context>

<pallas_src>
import functools

import jax
import jax.numpy as jnp
from jax import lax
from jax.experimental import pallas as pl
from jax.experimental.pallas import tpu as pltpu

_COMPUTE_DTYPE = jnp.bfloat16  # MXU matmul dtype; accumulation / epilogue f32


def _round_up(n, m):
    return ((n + m - 1) // m) * m


def _layer_norm(h, gamma, beta, eps=1e-5):
    mu = jnp.mean(h, axis=-1, keepdims=True)
    c = h - mu
    var = jnp.mean(c * c, axis=-1, keepdims=True)
    return c * lax.rsqrt(var + eps) * gamma + beta


def torp_kernel(x_ref, win_ref, bin_ref,
                wattn_ref, battn_ref, g1_ref, be1_ref,
                w1_ref, b1_ref, w2_ref, b2_ref, g2_ref, be2_ref,
                wout_ref, bout_ref, out_ref):
    f32 = jnp.float32

    def mm(a, w):
        # MXU matmul in the weights' dtype (bf16) with f32 accumulation.
        return jnp.dot(a.astype(w.dtype), w, preferred_element_type=f32)

    # input_proj + ReLU   (the length-1 seq axis stays squeezed: (TB, H))
    h = jnp.maximum(mm(x_ref[...], win_ref[...]) + bin_ref[...], 0.0)

    num_layers = wattn_ref.shape[0]
    for l in range(num_layers):          # static unroll (num_layers == 2)
        # --- self-attention block, collapsed for seq_len == 1:
        #     out_proj(value_proj(h)) == h @ (Wv Wo) + (bv Wo + bo),
        #     pre-folded in f32 in prepare_params(). ---
        a = mm(h, wattn_ref[l]) + battn_ref[l]
        h = _layer_norm(h + a, g1_ref[l], be1_ref[l])
        # --- feed-forward block (Linear -> ReLU -> Linear) ---
        f = jnp.maximum(mm(h, w1_ref[l]) + b1_ref[l], 0.0)
        f = mm(f, w2_ref[l]) + b2_ref[l]
        h = _layer_norm(h + f, g2_ref[l], be2_ref[l])

    # Attention pooling over the length-1 seq axis: softmax == 1 -> identity.

    # fc_out + softmax.  Padded output lanes carry a -1e30 bias, so
    # exp(logit - max) == 0 there and they drop out of the denominator.
    logits = mm(h, wout_ref[...]) + bout_ref[...]
    m = jnp.max(logits, axis=-1, keepdims=True)
    e = jnp.exp(logits - m)
    denom = jnp.sum(e, axis=-1, keepdims=True)
    out_ref[...] = e * pl.reciprocal(denom, approx=True)


def prepare_params(params):
    """One-time parameter preprocessing (hoisted out of the per-call path):
    fold the seq_len==1-collapsed attention projections in f32, cast matmul
    weights to bf16 once, pad fc_out to 128 lanes (lane-dense store), and
    reshape biases / LN params for in-kernel broadcast.

    Returns (weights_tuple, out_dim)."""
    (win, b_in, wv, bv, wo, bo, g1, be1,
     w1, b1, w2, b2, g2, be2, wout, bout) = params
    f32, cd = jnp.float32, _COMPUTE_DTYPE
    H = win.shape[1]
    K = wout.shape[1]
    L = wv.shape[0]
    FF = w1.shape[2]

    # Fold value/output attention projections (exact; done in f32, cast once).
    wattn = jnp.einsum("lij,ljk->lik", wv.astype(f32), wo.astype(f32))
    battn = jnp.einsum("li,lik->lk", bv.astype(f32), wo.astype(f32)) + bo.astype(f32)

    # Lane-dense output: pad fc_out to a multiple of 128 lanes; pad lanes get a
    # -1e30 bias so the softmax assigns them exactly 0.
    K_pad = _round_up(max(K, 128), 128)
    wout_p = jnp.zeros((H, K_pad), cd).at[:, :K].set(wout.astype(cd))
    bout_p = jnp.full((1, K_pad), -1e30, f32).at[0, :K].set(bout.astype(f32))

    weights = (
        win.astype(cd), b_in.astype(f32).reshape(1, H),
        wattn.astype(cd), battn.reshape(L, 1, H),
        g1.astype(f32).reshape(L, 1, H), be1.astype(f32).reshape(L, 1, H),
        w1.astype(cd), b1.astype(f32).reshape(L, 1, FF),
        w2.astype(cd), b2.astype(f32).reshape(L, 1, H),
        g2.astype(f32).reshape(L, 1, H), be2.astype(f32).reshape(L, 1, H),
        wout_p, bout_p,
    )
    return weights, int(K)


@functools.partial(jax.jit, static_argnames=("out_dim", "block_b"))
def torp_forward(x, weights, *, out_dim, block_b=2048):
    """TORP forward.  x: (B, input_dim) f32, weights from prepare_params().
    Returns (B, out_dim) f32 softmax probabilities."""
    (win, b_in, wattn, battn, g1, be1,
     w1, b1, w2, b2, g2, be2, wout_p, bout_p) = weights

    B, d_in = x.shape
    H = win.shape[1]
    FF = w1.shape[2]
    K_pad = wout_p.shape[1]
    f32, cd = jnp.float32, _COMPUTE_DTYPE

    # --- batch tile selection: VMEM-budget driven, >= 2 grid steps (v7x) ---
    # Per-row VMEM bytes: double-buffered x (bf16) + out (f32) blocks plus the
    # f32 intermediates (h, residual, f, logits).
    per_row = (2 * d_in * 2) + (2 * K_pad * 4) + 4 * (2 * H + FF + K_pad)
    TB = min(block_b, max(16, (12 << 20) // per_row))   # 12 MiB v5e-safe budget
    TB = max(16, (TB // 16) * 16)                        # bf16 sublane packing
    if _round_up(B, TB) // TB < 2:
        # Guarantee >= 2 grid steps so the "parallel" batch axis can be sharded
        # across both TensorCores on v7x (no effect on v5e/v6e: 1 TC).
        TB = max(16, _round_up(pl.cdiv(B, 2), 16))
    B_pad = _round_up(B, TB)
    if B_pad // TB < 2:
        B_pad = 2 * TB

    x_p = x.astype(cd)
    if B_pad != B:
        x_p = jnp.pad(x_p, ((0, B_pad - B), (0, 0)))

    # --- VMEM budget: explicit limit; single-buffer resident weights when the
    # weight set is large (keeps production-size H within v7x's 64 MiB). ---
    weight_bytes = sum(int(w.size) * w.dtype.itemsize for w in weights)
    single_buffer = weight_bytes > (8 << 20)
    wbuf = 1 if single_buffer else 2
    vmem_limit = int(max(32 << 20,
                         wbuf * weight_bytes + TB * per_row + (8 << 20)))

    def const_spec(arr):
        # Full-array block, constant index map: fetched once, resident across
        # all batch tiles (no per-step weight re-DMA).
        rank = arr.ndim
        kw = {"pipeline_mode": pl.Buffered(1)} if single_buffer else {}
        return pl.BlockSpec(arr.shape, lambda i, _r=rank: (0,) * _r, **kw)

    in_specs = ([pl.BlockSpec((TB, d_in), lambda i: (i, 0))]
                + [const_spec(w) for w in weights])
    out_spec = pl.BlockSpec((TB, K_pad), lambda i: (i, 0))

    out = pl.pallas_call(
        torp_kernel,
        out_shape=jax.ShapeDtypeStruct((B_pad, K_pad), f32),
        grid=(B_pad // TB,),
        in_specs=in_specs,
        out_specs=out_spec,
        compiler_params=pltpu.CompilerParams(
            dimension_semantics=("parallel",),
            vmem_limit_bytes=vmem_limit),
    )(x_p, *weights)
    return out[:B, :out_dim]


def torp_reference(x, params):
    """Pure-JAX f32 reference of the seq_len==1-collapsed PyTorch forward."""
    (win, b_in, wv, bv, wo, bo, g1, be1,
     w1, b1, w2, b2, g2, be2, wout, bout) = params
    h = jax.nn.relu(x @ win + b_in)
    for l in range(wv.shape[0]):
        a = (h @ wv[l] + bv[l]) @ wo[l] + bo[l]     # attn collapses to 2 linears
        h = _layer_norm(h + a, g1[l], be1[l])
        f = jax.nn.relu(h @ w1[l] + b1[l]) @ w2[l] + b2[l]
        h = _layer_norm(h + f, g2[l], be2[l])
    return jax.nn.softmax(h @ wout + bout, axis=-1)


def init_params(key, input_dim, hidden_dim, output_dim, num_layers=2):
    """Deterministic synthetic parameters (Linear weights stored as (in, out),
    per-layer weights stacked along a leading num_layers axis)."""
    H, FF, L = hidden_dim, 2 * hidden_dim, num_layers
    ks = iter(jax.random.split(key, 8 + 8 * num_layers))

    def w(shape):
        fan_in = shape[-2]
        return (jax.random.normal(next(ks), shape, jnp.float32)
                / jnp.sqrt(jnp.float32(fan_in)))

    def b(shape):
        return jax.random.normal(next(ks), shape, jnp.float32) * 0.01

    win, b_in = w((input_dim, H)), b((H,))
    wv, bv = w((L, H, H)), b((L, H))          # attention value projection
    wo, bo = w((L, H, H)), b((L, H))          # attention output projection
    w1, b1 = w((L, H, FF)), b((L, FF))        # FFN linear1
    w2, b2 = w((L, FF, H)), b((L, H))         # FFN linear2
    g1 = jnp.ones((L, H), jnp.float32)        # LayerNorm1 weight
    be1 = jnp.zeros((L, H), jnp.float32)      # LayerNorm1 bias
    g2 = jnp.ones((L, H), jnp.float32)        # LayerNorm2 weight
    be2 = jnp.zeros((L, H), jnp.float32)      # LayerNorm2 bias
    wout, bout = w((H, output_dim)), b((output_dim,))
    return (win, b_in, wv, bv, wo, bo, g1, be1,
            w1, b1, w2, b2, g2, be2, wout, bout)


if __name__ == "__main__":
    input_dim, hidden_dim, output_dim = 16, 32, 5
    num_layers, batch = 2, 8

    key = jax.random.PRNGKey(0)
    kx, kp = jax.random.split(key)
    x = jax.random.normal(kx, (batch, input_dim), jnp.float32)
    params = init_params(kp, input_dim, hidden_dim, output_dim, num_layers)

    weights, out_dim = prepare_params(params)       # one-time preprocessing
    probs = torp_forward(x, weights, out_dim=out_dim)
    jax.block_until_ready(probs)

    assert probs.shape == (batch, output_dim)
    # Each row is a softmax distribution: nonnegative, sums to ~1
    # (approx reciprocal + bf16 matmuls -> loose tolerance).
    assert bool(jnp.all(probs >= 0.0))
    assert bool(jnp.allclose(jnp.sum(probs, axis=1), 1.0, atol=1e-2))

    # Compare against the f32 pure-JAX reference (bf16 MXU path -> ~1e-2 abs).
    ref = torp_reference(x, params)
    assert bool(jnp.allclose(probs, ref, atol=3e-2)), \
        float(jnp.max(jnp.abs(probs - ref)))

    print("KERNEL_OK")
</pallas_src>

<mosaic_0001>
module attributes {stable_mosaic.version = 11 : i64} {
  func.func @torp_kernel(%arg0: i32, %arg1: memref<16x16xbf16, #tpu.memory_space<vmem>>, %arg2: memref<16x32xbf16, #tpu.memory_space<vmem>>, %arg3: memref<1x32xf32, #tpu.memory_space<vmem>>, %arg4: memref<2x32x32xbf16, #tpu.memory_space<vmem>>, %arg5: memref<2x1x32xf32, #tpu.memory_space<vmem>>, %arg6: memref<2x1x32xf32, #tpu.memory_space<vmem>>, %arg7: memref<2x1x32xf32, #tpu.memory_space<vmem>>, %arg8: memref<2x32x64xbf16, #tpu.memory_space<vmem>>, %arg9: memref<2x1x64xf32, #tpu.memory_space<vmem>>, %arg10: memref<2x64x32xbf16, #tpu.memory_space<vmem>>, %arg11: memref<2x1x32xf32, #tpu.memory_space<vmem>>, %arg12: memref<2x1x32xf32, #tpu.memory_space<vmem>>, %arg13: memref<2x1x32xf32, #tpu.memory_space<vmem>>, %arg14: memref<32x128xbf16, #tpu.memory_space<vmem>>, %arg15: memref<1x128xf32, #tpu.memory_space<vmem>>, %arg16: memref<16x128xf32, #tpu.memory_space<vmem>>) attributes {dimension_semantics = [#tpu.dimension_semantics<parallel>], iteration_bounds = array<i64: 2>, scalar_prefetch = 0 : i64, scratch_operands = 0 : i64, tpu.core_type = #tpu.core_type<tc>, window_params = [{transform_indices = @transform_0, window_bounds = array<i64: 16, 16>}, {pipeline_mode = #tpu.pipeline_mode<synchronous>, transform_indices = @transform_1, window_bounds = array<i64: 16, 32>}, {pipeline_mode = #tpu.pipeline_mode<synchronous>, transform_indices = @transform_2, window_bounds = array<i64: 1, 32>}, {pipeline_mode = #tpu.pipeline_mode<synchronous>, transform_indices = @transform_3, window_bounds = array<i64: 2, 32, 32>}, {pipeline_mode = #tpu.pipeline_mode<synchronous>, transform_indices = @transform_4, window_bounds = array<i64: 2, 1, 32>}, {pipeline_mode = #tpu.pipeline_mode<synchronous>, transform_indices = @transform_5, window_bounds = array<i64: 2, 1, 32>}, {pipeline_mode = #tpu.pipeline_mode<synchronous>, transform_indices = @transform_6, window_bounds = array<i64: 2, 1, 32>}, {pipeline_mode = #tpu.pipeline_mode<synchronous>, transform_indices = @transform_7, window_bounds = array<i64: 2, 32, 64>}, {pipeline_mode = #tpu.pipeline_mode<synchronous>, transform_indices = @transform_8, window_bounds = array<i64: 2, 1, 64>}, {pipeline_mode = #tpu.pipeline_mode<synchronous>, transform_indices = @transform_9, window_bounds = array<i64: 2, 64, 32>}, {pipeline_mode = #tpu.pipeline_mode<synchronous>, transform_indices = @transform_10, window_bounds = array<i64: 2, 1, 32>}, {pipeline_mode = #tpu.pipeline_mode<synchronous>, transform_indices = @transform_11, window_bounds = array<i64: 2, 1, 32>}, {pipeline_mode = #tpu.pipeline_mode<synchronous>, transform_indices = @transform_12, window_bounds = array<i64: 2, 1, 32>}, {pipeline_mode = #tpu.pipeline_mode<synchronous>, transform_indices = @transform_13, window_bounds = array<i64: 32, 128>}, {pipeline_mode = #tpu.pipeline_mode<synchronous>, transform_indices = @transform_14, window_bounds = array<i64: 1, 128>}, {transform_indices = @transform_15, window_bounds = array<i64: 16, 128>}]} {
    %c0 = arith.constant 0 : index
    %c0_0 = arith.constant 0 : index
    %0 = vector.load %arg1[%c0, %c0_0] : memref<16x16xbf16, #tpu.memory_space<vmem>>, vector<16x16xbf16>
    %c0_1 = arith.constant 0 : index
    %c0_2 = arith.constant 0 : index
    %1 = vector.load %arg2[%c0_1, %c0_2] : memref<16x32xbf16, #tpu.memory_space<vmem>>, vector<16x32xbf16>
    %cst = arith.constant dense<0.000000e+00> : vector<16x32xf32>
    %2 = tpu.matmul %0, %1, %cst {dimension_numbers = #tpu.dot_dimension_numbers<[1], [0], [0], [1], [0, 0, 1, 1], [], []>} : vector<16x16xbf16>, vector<16x32xbf16>, vector<16x32xf32> -> vector<16x32xf32>
    %c0_3 = arith.constant 0 : index
    %c0_4 = arith.constant 0 : index
    %3 = vector.load %arg3[%c0_3, %c0_4] : memref<1x32xf32, #tpu.memory_space<vmem>>, vector<1x32xf32>
    %4 = vector.broadcast %3 : vector<1x32xf32> to vector<16x32xf32>
    %5 = arith.addf %2, %4 : vector<16x32xf32>
    %cst_5 = arith.constant 0.000000e+00 : f32
    %6 = vector.broadcast %cst_5 : f32 to vector<16x32xf32>
    %7 = arith.maximumf %5, %6 : vector<16x32xf32>
    %c0_6 = arith.constant 0 : index
    %c0_7 = arith.constant 0 : index
    %c0_8 = arith.constant 0 : index
    %8 = vector.load %arg4[%c0_6, %c0_7, %c0_8] : memref<2x32x32xbf16, #tpu.memory_space<vmem>>, vector<1x32x32xbf16>
    %9 = vector.shape_cast %8 : vector<1x32x32xbf16> to vector<32x32xbf16>
    %10 = arith.truncf %7 : vector<16x32xf32> to vector<16x32xbf16>
    %cst_9 = arith.constant dense<0.000000e+00> : vector<16x32xf32>
    %11 = tpu.matmul %10, %9, %cst_9 {dimension_numbers = #tpu.dot_dimension_numbers<[1], [0], [0], [1], [0, 0, 1, 1], [], []>} : vector<16x32xbf16>, vector<32x32xbf16>, vector<16x32xf32> -> vector<16x32xf32>
    %c0_10 = arith.constant 0 : index
    %c0_11 = arith.constant 0 : index
    %c0_12 = arith.constant 0 : index
    %12 = vector.load %arg5[%c0_10, %c0_11, %c0_12] : memref<2x1x32xf32, #tpu.memory_space<vmem>>, vector<1x1x32xf32>
    %13 = vector.shape_cast %12 : vector<1x1x32xf32> to vector<1x32xf32>
    %14 = vector.broadcast %13 : vector<1x32xf32> to vector<16x32xf32>
    %15 = arith.addf %11, %14 : vector<16x32xf32>
    %16 = arith.addf %7, %15 : vector<16x32xf32>
    %c0_13 = arith.constant 0 : index
    %c0_14 = arith.constant 0 : index
    %c0_15 = arith.constant 0 : index
    %17 = vector.load %arg6[%c0_13, %c0_14, %c0_15] : memref<2x1x32xf32, #tpu.memory_space<vmem>>, vector<1x1x32xf32>
    %18 = vector.shape_cast %17 : vector<1x1x32xf32> to vector<1x32xf32>
    %c0_16 = arith.constant 0 : index
    %c0_17 = arith.constant 0 : index
    %c0_18 = arith.constant 0 : index
    %19 = vector.load %arg7[%c0_16, %c0_17, %c0_18] : memref<2x1x32xf32, #tpu.memory_space<vmem>>, vector<1x1x32xf32>
    %20 = vector.shape_cast %19 : vector<1x1x32xf32> to vector<1x32xf32>
    %cst_19 = arith.constant dense<0.000000e+00> : vector<16xf32>
    %21 = vector.multi_reduction <add>, %16, %cst_19 [1] : vector<16x32xf32> to vector<16xf32>
    %22 = vector.shape_cast %21 : vector<16xf32> to vector<16x1xf32>
    %cst_20 = arith.constant 3.200000e+01 : f32
    %23 = vector.broadcast %cst_20 : f32 to vector<16x1xf32>
    %24 = arith.divf %22, %23 : vector<16x1xf32>
    %25 = vector.broadcast %24 : vector<16x1xf32> to vector<16x32xf32>
    %26 = arith.subf %16, %25 : vector<16x32xf32>
    %27 = arith.mulf %26, %26 : vector<16x32xf32>
    %cst_21 = arith.constant dense<0.000000e+00> : vector<16xf32>
    %28 = vector.multi_reduction <add>, %27, %cst_21 [1] : vector<16x32xf32> to vector<16xf32>
    %29 = vector.shape_cast %28 : vector<16xf32> to vector<16x1xf32>
    %cst_22 = arith.constant 3.200000e+01 : f32
    %30 = vector.broadcast %cst_22 : f32 to vector<16x1xf32>
    %31 = arith.divf %29, %30 : vector<16x1xf32>
    %cst_23 = arith.constant 9.99999974E-6 : f32
    %32 = vector.broadcast %cst_23 : f32 to vector<16x1xf32>
    %33 = arith.addf %31, %32 : vector<16x1xf32>
    %34 = math.rsqrt %33 : vector<16x1xf32>
    %35 = vector.broadcast %34 : vector<16x1xf32> to vector<16x32xf32>
    %36 = arith.mulf %26, %35 : vector<16x32xf32>
    %37 = vector.broadcast %18 : vector<1x32xf32> to vector<16x32xf32>
    %38 = arith.mulf %36, %37 : vector<16x32xf32>
    %39 = vector.broadcast %20 : vector<1x32xf32> to vector<16x32xf32>
    %40 = arith.addf %38, %39 : vector<16x32xf32>
    %c0_24 = arith.constant 0 : index
    %c0_25 = arith.constant 0 : index
    %c0_26 = arith.constant 0 : index
    %41 = vector.load %arg8[%c0_24, %c0_25, %c0_26] : memref<2x32x64xbf16, #tpu.memory_space<vmem>>, vector<1x32x64xbf16>
    %42 = vector.shape_cast %41 : vector<1x32x64xbf16> to vector<32x64xbf16>
    %43 = arith.truncf %40 : vector<16x32xf32> to vector<16x32xbf16>
    %cst_27 = arith.constant dense<0.000000e+00> : vector<16x64xf32>
    %44 = tpu.matmul %43, %42, %cst_27 {dimension_numbers = #tpu.dot_dimension_numbers<[1], [0], [0], [1], [0, 0, 1, 1], [], []>} : vector<16x32xbf16>, vector<32x64xbf16>, vector<16x64xf32> -> vector<16x64xf32>
    %c0_28 = arith.constant 0 : index
    %c0_29 = arith.constant 0 : index
    %c0_30 = arith.constant 0 : index
    %45 = vector.load %arg9[%c0_28, %c0_29, %c0_30] : memref<2x1x64xf32, #tpu.memory_space<vmem>>, vector<1x1x64xf32>
    %46 = vector.shape_cast %45 : vector<1x1x64xf32> to vector<1x64xf32>
    %47 = vector.broadcast %46 : vector<1x64xf32> to vector<16x64xf32>
    %48 = arith.addf %44, %47 : vector<16x64xf32>
    %cst_31 = arith.constant 0.000000e+00 : f32
    %49 = vector.broadcast %cst_31 : f32 to vector<16x64xf32>
    %50 = arith.maximumf %48, %49 : vector<16x64xf32>
    %c0_32 = arith.constant 0 : index
    %c0_33 = arith.constant 0 : index
    %c0_34 = arith.constant 0 : index
    %51 = vector.load %arg10[%c0_32, %c0_33, %c0_34] : memref<2x64x32xbf16, #tpu.memory_space<vmem>>, vector<1x64x32xbf16>
    %52 = vector.shape_cast %51 : vector<1x64x32xbf16> to vector<64x32xbf16>
    %53 = arith.truncf %50 : vector<16x64xf32> to vector<16x64xbf16>
    %cst_35 = arith.constant dense<0.000000e+00> : vector<16x32xf32>
    %54 = tpu.matmul %53, %52, %cst_35 {dimension_numbers = #tpu.dot_dimension_numbers<[1], [0], [0], [1], [0, 0, 1, 1], [], []>} : vector<16x64xbf16>, vector<64x32xbf16>, vector<16x32xf32> -> vector<16x32xf32>
    %c0_36 = arith.constant 0 : index
    %c0_37 = arith.constant 0 : index
    %c0_38 = arith.constant 0 : index
    %55 = vector.load %arg11[%c0_36, %c0_37, %c0_38] : memref<2x1x32xf32, #tpu.memory_space<vmem>>, vector<1x1x32xf32>
    %56 = vector.shape_cast %55 : vector<1x1x32xf32> to vector<1x32xf32>
    %57 = vector.broadcast %56 : vector<1x32xf32> to vector<16x32xf32>
    %58 = arith.addf %54, %57 : vector<16x32xf32>
    %59 = arith.addf %40, %58 : vector<16x32xf32>
    %c0_39 = arith.constant 0 : index
    %c0_40 = arith.constant 0 : index
    %c0_41 = arith.constant 0 : index
    %60 = vector.load %arg12[%c0_39, %c0_40, %c0_41] : memref<2x1x32xf32, #tpu.memory_space<vmem>>, vector<1x1x32xf32>
    %61 = vector.shape_cast %60 : vector<1x1x32xf32> to vector<1x32xf32>
    %c0_42 = arith.constant 0 : index
    %c0_43 = arith.constant 0 : index
    %c0_44 = arith.constant 0 : index
    %62 = vector.load %arg13[%c0_42, %c0_43, %c0_44] : memref<2x1x32xf32, #tpu.memory_space<vmem>>, vector<1x1x32xf32>
    %63 = vector.shape_cast %62 : vector<1x1x32xf32> to vector<1x32xf32>
    %cst_45 = arith.constant dense<0.000000e+00> : vector<16xf32>
    %64 = vector.multi_reduction <add>, %59, %cst_45 [1] : vector<16x32xf32> to vector<16xf32>
    %65 = vector.shape_cast %64 : vector<16xf32> to vector<16x1xf32>
    %cst_46 = arith.constant 3.200000e+01 : f32
    %66 = vector.broadcast %cst_46 : f32 to vector<16x1xf32>
    %67 = arith.divf %65, %66 : vector<16x1xf32>
    %68 = vector.broadcast %67 : vector<16x1xf32> to vector<16x32xf32>
    %69 = arith.subf %59, %68 : vector<16x32xf32>
    %70 = arith.mulf %69, %69 : vector<16x32xf32>
    %cst_47 = arith.constant dense<0.000000e+00> : vector<16xf32>
    %71 = vector.multi_reduction <add>, %70, %cst_47 [1] : vector<16x32xf32> to vector<16xf32>
    %72 = vector.shape_cast %71 : vector<16xf32> to vector<16x1xf32>
    %cst_48 = arith.constant 3.200000e+01 : f32
    %73 = vector.broadcast %cst_48 : f32 to vector<16x1xf32>
    %74 = arith.divf %72, %73 : vector<16x1xf32>
    %cst_49 = arith.constant 9.99999974E-6 : f32
    %75 = vector.broadcast %cst_49 : f32 to vector<16x1xf32>
    %76 = arith.addf %74, %75 : vector<16x1xf32>
    %77 = math.rsqrt %76 : vector<16x1xf32>
    %78 = vector.broadcast %77 : vector<16x1xf32> to vector<16x32xf32>
    %79 = arith.mulf %69, %78 : vector<16x32xf32>
    %80 = vector.broadcast %61 : vector<1x32xf32> to vector<16x32xf32>
    %81 = arith.mulf %79, %80 : vector<16x32xf32>
    %82 = vector.broadcast %63 : vector<1x32xf32> to vector<16x32xf32>
    %83 = arith.addf %81, %82 : vector<16x32xf32>
    %c1 = arith.constant 1 : index
    %c0_50 = arith.constant 0 : index
    %c0_51 = arith.constant 0 : index
    %84 = vector.load %arg4[%c1, %c0_50, %c0_51] : memref<2x32x32xbf16, #tpu.memory_space<vmem>>, vector<1x32x32xbf16>
    %85 = vector.shape_cast %84 : vector<1x32x32xbf16> to vector<32x32xbf16>
    %86 = arith.truncf %83 : vector<16x32xf32> to vector<16x32xbf16>
    %cst_52 = arith.constant dense<0.000000e+00> : vector<16x32xf32>
    %87 = tpu.matmul %86, %85, %cst_52 {dimension_numbers = #tpu.dot_dimension_numbers<[1], [0], [0], [1], [0, 0, 1, 1], [], []>} : vector<16x32xbf16>, vector<32x32xbf16>, vector<16x32xf32> -> vector<16x32xf32>
    %c1_53 = arith.constant 1 : index
    %c0_54 = arith.constant 0 : index
    %c0_55 = arith.constant 0 : index
    %88 = vector.load %arg5[%c1_53, %c0_54, %c0_55] : memref<2x1x32xf32, #tpu.memory_space<vmem>>, vector<1x1x32xf32>
    %89 = vector.shape_cast %88 : vector<1x1x32xf32> to vector<1x32xf32>
    %90 = vector.broadcast %89 : vector<1x32xf32> to vector<16x32xf32>
    %91 = arith.addf %87, %90 : vector<16x32xf32>
    %92 = arith.addf %83, %91 : vector<16x32xf32>
    %c1_56 = arith.constant 1 : index
    %c0_57 = arith.constant 0 : index
    %c0_58 = arith.constant 0 : index
    %93 = vector.load %arg6[%c1_56, %c0_57, %c0_58] : memref<2x1x32xf32, #tpu.memory_space<vmem>>, vector<1x1x32xf32>
    %94 = vector.shape_cast %93 : vector<1x1x32xf32> to vector<1x32xf32>
    %c1_59 = arith.constant 1 : index
    %c0_60 = arith.constant 0 : index
    %c0_61 = arith.constant 0 : index
    %95 = vector.load %arg7[%c1_59, %c0_60, %c0_61] : memref<2x1x32xf32, #tpu.memory_space<vmem>>, vector<1x1x32xf32>
    %96 = vector.shape_cast %95 : vector<1x1x32xf32> to vector<1x32xf32>
    %cst_62 = arith.constant dense<0.000000e+00> : vector<16xf32>
    %97 = vector.multi_reduction <add>, %92, %cst_62 [1] : vector<16x32xf32> to vector<16xf32>
    %98 = vector.shape_cast %97 : vector<16xf32> to vector<16x1xf32>
    %cst_63 = arith.constant 3.200000e+01 : f32
    %99 = vector.broadcast %cst_63 : f32 to vector<16x1xf32>
    %100 = arith.divf %98, %99 : vector<16x1xf32>
    %101 = vector.broadcast %100 : vector<16x1xf32> to vector<16x32xf32>
    %102 = arith.subf %92, %101 : vector<16x32xf32>
    %103 = arith.mulf %102, %102 : vector<16x32xf32>
    %cst_64 = arith.constant dense<0.000000e+00> : vector<16xf32>
    %104 = vector.multi_reduction <add>, %103, %cst_64 [1] : vector<16x32xf32> to vector<16xf32>
    %105 = vector.shape_cast %104 : vector<16xf32> to vector<16x1xf32>
    %cst_65 = arith.constant 3.200000e+01 : f32
    %106 = vector.broadcast %cst_65 : f32 to vector<16x1xf32>
    %107 = arith.divf %105, %106 : vector<16x1xf32>
    %cst_66 = arith.constant 9.99999974E-6 : f32
    %108 = vector.broadcast %cst_66 : f32 to vector<16x1xf32>
    %109 = arith.addf %107, %108 : vector<16x1xf32>
    %110 = math.rsqrt %109 : vector<16x1xf32>
    %111 = vector.broadcast %110 : vector<16x1xf32> to vector<16x32xf32>
    %112 = arith.mulf %102, %111 : vector<16x32xf32>
    %113 = vector.broadcast %94 : vector<1x32xf32> to vector<16x32xf32>
    %114 = arith.mulf %112, %113 : vector<16x32xf32>
    %115 = vector.broadcast %96 : vector<1x32xf32> to vector<16x32xf32>
    %116 = arith.addf %114, %115 : vector<16x32xf32>
    %c1_67 = arith.constant 1 : index
    %c0_68 = arith.constant 0 : index
    %c0_69 = arith.constant 0 : index
    %117 = vector.load %arg8[%c1_67, %c0_68, %c0_69] : memref<2x32x64xbf16, #tpu.memory_space<vmem>>, vector<1x32x64xbf16>
    %118 = vector.shape_cast %117 : vector<1x32x64xbf16> to vector<32x64xbf16>
    %119 = arith.truncf %116 : vector<16x32xf32> to vector<16x32xbf16>
    %cst_70 = arith.constant dense<0.000000e+00> : vector<16x64xf32>
    %120 = tpu.matmul %119, %118, %cst_70 {dimension_numbers = #tpu.dot_dimension_numbers<[1], [0], [0], [1], [0, 0, 1, 1], [], []>} : vector<16x32xbf16>, vector<32x64xbf16>, vector<16x64xf32> -> vector<16x64xf32>
    %c1_71 = arith.constant 1 : index
    %c0_72 = arith.constant 0 : index
    %c0_73 = arith.constant 0 : index
    %121 = vector.load %arg9[%c1_71, %c0_72, %c0_73] : memref<2x1x64xf32, #tpu.memory_space<vmem>>, vector<1x1x64xf32>
    %122 = vector.shape_cast %121 : vector<1x1x64xf32> to vector<1x64xf32>
    %123 = vector.broadcast %122 : vector<1x64xf32> to vector<16x64xf32>
    %124 = arith.addf %120, %123 : vector<16x64xf32>
    %cst_74 = arith.constant 0.000000e+00 : f32
    %125 = vector.broadcast %cst_74 : f32 to vector<16x64xf32>
    %126 = arith.maximumf %124, %125 : vector<16x64xf32>
    %c1_75 = arith.constant 1 : index
    %c0_76 = arith.constant 0 : index
    %c0_77 = arith.constant 0 : index
    %127 = vector.load %arg10[%c1_75, %c0_76, %c0_77] : memref<2x64x32xbf16, #tpu.memory_space<vmem>>, vector<1x64x32xbf16>
    %128 = vector.shape_cast %127 : vector<1x64x32xbf16> to vector<64x32xbf16>
    %129 = arith.truncf %126 : vector<16x64xf32> to vector<16x64xbf16>
    %cst_78 = arith.constant dense<0.000000e+00> : vector<16x32xf32>
    %130 = tpu.matmul %129, %128, %cst_78 {dimension_numbers = #tpu.dot_dimension_numbers<[1], [0], [0], [1], [0, 0, 1, 1], [], []>} : vector<16x64xbf16>, vector<64x32xbf16>, vector<16x32xf32> -> vector<16x32xf32>
    %c1_79 = arith.constant 1 : index
    %c0_80 = arith.constant 0 : index
    %c0_81 = arith.constant 0 : index
    %131 = vector.load %arg11[%c1_79, %c0_80, %c0_81] : memref<2x1x32xf32, #tpu.memory_space<vmem>>, vector<1x1x32xf32>
    %132 = vector.shape_cast %131 : vector<1x1x32xf32> to vector<1x32xf32>
    %133 = vector.broadcast %132 : vector<1x32xf32> to vector<16x32xf32>
    %134 = arith.addf %130, %133 : vector<16x32xf32>
    %135 = arith.addf %116, %134 : vector<16x32xf32>
    %c1_82 = arith.constant 1 : index
    %c0_83 = arith.constant 0 : index
    %c0_84 = arith.constant 0 : index
    %136 = vector.load %arg12[%c1_82, %c0_83, %c0_84] : memref<2x1x32xf32, #tpu.memory_space<vmem>>, vector<1x1x32xf32>
    %137 = vector.shape_cast %136 : vector<1x1x32xf32> to vector<1x32xf32>
    %c1_85 = arith.constant 1 : index
    %c0_86 = arith.constant 0 : index
    %c0_87 = arith.constant 0 : index
    %138 = vector.load %arg13[%c1_85, %c0_86, %c0_87] : memref<2x1x32xf32, #tpu.memory_space<vmem>>, vector<1x1x32xf32>
    %139 = vector.shape_cast %138 : vector<1x1x32xf32> to vector<1x32xf32>
    %cst_88 = arith.constant dense<0.000000e+00> : vector<16xf32>
    %140 = vector.multi_reduction <add>, %135, %cst_88 [1] : vector<16x32xf32> to vector<16xf32>
    %141 = vector.shape_cast %140 : vector<16xf32> to vector<16x1xf32>
    %cst_89 = arith.constant 3.200000e+01 : f32
    %142 = vector.broadcast %cst_89 : f32 to vector<16x1xf32>
    %143 = arith.divf %141, %142 : vector<16x1xf32>
    %144 = vector.broadcast %143 : vector<16x1xf32> to vector<16x32xf32>
    %145 = arith.subf %135, %144 : vector<16x32xf32>
    %146 = arith.mulf %145, %145 : vector<16x32xf32>
    %cst_90 = arith.constant dense<0.000000e+00> : vector<16xf32>
    %147 = vector.multi_reduction <add>, %146, %cst_90 [1] : vector<16x32xf32> to vector<16xf32>
    %148 = vector.shape_cast %147 : vector<16xf32> to vector<16x1xf32>
    %cst_91 = arith.constant 3.200000e+01 : f32
    %149 = vector.broadcast %cst_91 : f32 to vector<16x1xf32>
    %150 = arith.divf %148, %149 : vector<16x1xf32>
    %cst_92 = arith.constant 9.99999974E-6 : f32
    %151 = vector.broadcast %cst_92 : f32 to vector<16x1xf32>
    %152 = arith.addf %150, %151 : vector<16x1xf32>
    %153 = math.rsqrt %152 : vector<16x1xf32>
    %154 = vector.broadcast %153 : vector<16x1xf32> to vector<16x32xf32>
    %155 = arith.mulf %145, %154 : vector<16x32xf32>
    %156 = vector.broadcast %137 : vector<1x32xf32> to vector<16x32xf32>
    %157 = arith.mulf %155, %156 : vector<16x32xf32>
    %158 = vector.broadcast %139 : vector<1x32xf32> to vector<16x32xf32>
    %159 = arith.addf %157, %158 : vector<16x32xf32>
    %c0_93 = arith.constant 0 : index
    %c0_94 = arith.constant 0 : index
    %160 = vector.load %arg14[%c0_93, %c0_94] : memref<32x128xbf16, #tpu.memory_space<vmem>>, vector<32x128xbf16>
    %161 = arith.truncf %159 : vector<16x32xf32> to vector<16x32xbf16>
    %cst_95 = arith.constant dense<0.000000e+00> : vector<16x128xf32>
    %162 = tpu.matmul %161, %160, %cst_95 {dimension_numbers = #tpu.dot_dimension_numbers<[1], [0], [0], [1], [0, 0, 1, 1], [], []>} : vector<16x32xbf16>, vector<32x128xbf16>, vector<16x128xf32> -> vector<16x128xf32>
    %c0_96 = arith.constant 0 : index
    %c0_97 = arith.constant 0 : index
    %163 = vector.load %arg15[%c0_96, %c0_97] : memref<1x128xf32, #tpu.memory_space<vmem>>, vector<1x128xf32>
    %164 = vector.broadcast %163 : vector<1x128xf32> to vector<16x128xf32>
    %165 = arith.addf %162, %164 : vector<16x128xf32>
    %cst_98 = arith.constant dense<0xFF800000> : vector<16xf32>
    %166 = vector.multi_reduction <maximumf>, %165, %cst_98 [1] : vector<16x128xf32> to vector<16xf32>
    %167 = vector.shape_cast %166 : vector<16xf32> to vector<16x1xf32>
    %168 = vector.broadcast %167 : vector<16x1xf32> to vector<16x128xf32>
    %169 = arith.subf %165, %168 : vector<16x128xf32>
    %170 = math.exp %169 : vector<16x128xf32>
    %cst_99 = arith.constant dense<0.000000e+00> : vector<16xf32>
    %171 = vector.multi_reduction <add>, %170, %cst_99 [1] : vector<16x128xf32> to vector<16xf32>
    %172 = vector.shape_cast %171 : vector<16xf32> to vector<16x1xf32>
    %173 = tpu.reciprocal %172 {approx = true} : vector<16x1xf32> -> vector<16x1xf32>
    %174 = vector.broadcast %173 : vector<16x1xf32> to vector<16x128xf32>
    %175 = arith.mulf %170, %174 : vector<16x128xf32>
    %c0_100 = arith.constant 0 : index
    %c0_101 = arith.constant 0 : index
    %176 = vector.load %arg16[%c0_100, %c0_101] : memref<16x128xf32, #tpu.memory_space<vmem>>, vector<16x128xf32>
    tpu.vector_store %arg16[%c0_100, %c0_101], %175 {strides = array<i32>} : memref<16x128xf32, #tpu.memory_space<vmem>>, vector<16x128xf32>,
    return
  }
  func.func @transform_0(%arg0: i32) -> (i32, i32) {
    %c0_i32 = arith.constant 0 : i32
    %c0_i32_0 = arith.constant 0 : i32
    return %arg0, %c0_i32 : i32, i32
  }
  func.func @transform_1(%arg0: i32) -> (i32, i32) {
    %c0_i32 = arith.constant 0 : i32
    %c0_i32_0 = arith.constant 0 : i32
    %c0_i32_1 = arith.constant 0 : i32
    return %c0_i32, %c0_i32_0 : i32, i32
  }
  func.func @transform_2(%arg0: i32) -> (i32, i32) {
    %c0_i32 = arith.constant 0 : i32
    %c0_i32_0 = arith.constant 0 : i32
    %c0_i32_1 = arith.constant 0 : i32
    return %c0_i32, %c0_i32_0 : i32, i32
  }
  func.func @transform_3(%arg0: i32) -> (i32, i32, i32) {
    %c0_i32 = arith.constant 0 : i32
    %c0_i32_0 = arith.constant 0 : i32
    %c0_i32_1 = arith.constant 0 : i32
    %c0_i32_2 = arith.constant 0 : i32
    return %c0_i32, %c0_i32_0, %c0_i32_1 : i32, i32, i32
  }
  func.func @transform_4(%arg0: i32) -> (i32, i32, i32) {
    %c0_i32 = arith.constant 0 : i32
    %c0_i32_0 = arith.constant 0 : i32
    %c0_i32_1 = arith.constant 0 : i32
    %c0_i32_2 = arith.constant 0 : i32
    return %c0_i32, %c0_i32_0, %c0_i32_1 : i32, i32, i32
  }
  func.func @transform_5(%arg0: i32) -> (i32, i32, i32) {
    %c0_i32 = arith.constant 0 : i32
    %c0_i32_0 = arith.constant 0 : i32
    %c0_i32_1 = arith.constant 0 : i32
    %c0_i32_2 = arith.constant 0 : i32
    return %c0_i32, %c0_i32_0, %c0_i32_1 : i32, i32, i32
  }
  func.func @transform_6(%arg0: i32) -> (i32, i32, i32) {
    %c0_i32 = arith.constant 0 : i32
    %c0_i32_0 = arith.constant 0 : i32
    %c0_i32_1 = arith.constant 0 : i32
    %c0_i32_2 = arith.constant 0 : i32
    return %c0_i32, %c0_i32_0, %c0_i32_1 : i32, i32, i32
  }
  func.func @transform_7(%arg0: i32) -> (i32, i32, i32) {
    %c0_i32 = arith.constant 0 : i32
    %c0_i32_0 = arith.constant 0 : i32
    %c0_i32_1 = arith.constant 0 : i32
    %c0_i32_2 = arith.constant 0 : i32
    return %c0_i32, %c0_i32_0, %c0_i32_1 : i32, i32, i32
  }
  func.func @transform_8(%arg0: i32) -> (i32, i32, i32) {
    %c0_i32 = arith.constant 0 : i32
    %c0_i32_0 = arith.constant 0 : i32
    %c0_i32_1 = arith.constant 0 : i32
    %c0_i32_2 = arith.constant 0 : i32
    return %c0_i32, %c0_i32_0, %c0_i32_1 : i32, i32, i32
  }
  func.func @transform_9(%arg0: i32) -> (i32, i32, i32) {
    %c0_i32 = arith.constant 0 : i32
    %c0_i32_0 = arith.constant 0 : i32
    %c0_i32_1 = arith.constant 0 : i32
    %c0_i32_2 = arith.constant 0 : i32
    return %c0_i32, %c0_i32_0, %c0_i32_1 : i32, i32, i32
  }
  func.func @transform_10(%arg0: i32) -> (i32, i32, i32) {
    %c0_i32 = arith.constant 0 : i32
    %c0_i32_0 = arith.constant 0 : i32
    %c0_i32_1 = arith.constant 0 : i32
    %c0_i32_2 = arith.constant 0 : i32
    return %c0_i32, %c0_i32_0, %c0_i32_1 : i32, i32, i32
  }
  func.func @transform_11(%arg0: i32) -> (i32, i32, i32) {
    %c0_i32 = arith.constant 0 : i32
    %c0_i32_0 = arith.constant 0 : i32
    %c0_i32_1 = arith.constant 0 : i32
    %c0_i32_2 = arith.constant 0 : i32
    return %c0_i32, %c0_i32_0, %c0_i32_1 : i32, i32, i32
  }
  func.func @transform_12(%arg0: i32) -> (i32, i32, i32) {
    %c0_i32 = arith.constant 0 : i32
    %c0_i32_0 = arith.constant 0 : i32
    %c0_i32_1 = arith.constant 0 : i32
    %c0_i32_2 = arith.constant 0 : i32
    return %c0_i32, %c0_i32_0, %c0_i32_1 : i32, i32, i32
  }
  func.func @transform_13(%arg0: i32) -> (i32, i32) {
    %c0_i32 = arith.constant 0 : i32
    %c0_i32_0 = arith.constant 0 : i32
    %c0_i32_1 = arith.constant 0 : i32
    return %c0_i32, %c0_i32_0 : i32, i32
  }
  func.func @transform_14(%arg0: i32) -> (i32, i32) {
    %c0_i32 = arith.constant 0 : i32
    %c0_i32_0 = arith.constant 0 : i32
    %c0_i32_1 = arith.constant 0 : i32
    return %c0_i32, %c0_i32_0 : i32, i32
  }
  func.func @transform_15(%arg0: i32) -> (i32, i32) {
    %c0_i32 = arith.constant 0 : i32
    %c0_i32_0 = arith.constant 0 : i32
    return %arg0, %c0_i32 : i32, i32
  }
}

</mosaic_0001>

<bundles_post_ra>
// kernel: torp_forward.1
= control target key start
LH: loop header
LB: loop body
LE: loop exit
PB: predicated region body
PF: predicated region fallthrough
CT: control target
= control target key end

     0   :  { %s1449_s18 = smov 0   ;;  %s1616_s0 = inlined_call_operand.vmem [shape: bf16[32,16], index: 0, kind: input, shape index: {}]   ;;  %s1617_s1 = inlined_call_operand.vmem [shape: bf16[16,32], index: 1, kind: input, shape index: {}]   ;;  %s1618_s2 = inlined_call_operand.vmem [shape: f32[1,32], index: 2, kind: input, shape index: {}]   ;;  %s1619_s3 = inlined_call_operand.vmem [shape: bf16[2,32,32], index: 3, kind: input, shape index: {}]   ;;  %s1620_s4 = inlined_call_operand.vmem [shape: f32[2,1,32], index: 4, kind: input, shape index: {}]   ;;  %s1621_s5 = inlined_call_operand.vmem [shape: f32[2,1,32], index: 5, kind: input, shape index: {}]   ;;  %s1622_s6 = inlined_call_operand.vmem [shape: f32[2,1,32], index: 6, kind: input, shape index: {}]   ;;  %s1623_s7 = inlined_call_operand.vmem [shape: bf16[2,32,64], index: 7, kind: input, shape index: {}]   ;;  %s1624_s8 = inlined_call_operand.vmem [shape: f32[2,1,64], index: 8, kind: input, shape index: {}]   ;;  %s1625_s9 = inlined_call_operand.vmem [shape: bf16[2,64,32], index: 9, kind: input, shape index: {}]   ;;  %s1626_s10 = inlined_call_operand.vmem [shape: f32[2,1,32], index: 10, kind: input, shape index: {}]   ;;  %s1627_s11 = inlined_call_operand.vmem [shape: f32[2,1,32], index: 11, kind: input, shape index: {}]   ;;  %s1628_s12 = inlined_call_operand.vmem [shape: f32[2,1,32], index: 12, kind: input, shape index: {}]   ;;  %s1629_s13 = inlined_call_operand.vmem [shape: bf16[32,128], index: 13, kind: input, shape index: {}]   ;;  %s1630_s14 = inlined_call_operand.vmem [shape: f32[1,128], index: 14, kind: input, shape index: {}]   ;;  %s1631_s15 = inlined_call_operand.vmem [shape: f32[32,128], index: 15, kind: output, shape index: {}]  }
   0x1 LB: > { %s1167_s19 = sadd.s32 4294967295, %s1366_s18   ;;  %p1171_p0 = scmp.ge.s32.totalorder %s1366_s18, 1  ;;  %s1366_s18 = sphi %s1449_s18, %s25_s18  }
   0x2   : > { %p438_p1 = scmp.lt.s32.totalorder %s1366_s18, 3 }
   0x4   : > { %p439_p2 = pnand %p1171_p0, %p438_p1 }
   0x5   : > { %s1172_s22 = sshll.u32 (!%p439_p2), %s1167_s19, 1 }
   0x6   : > { %442 = sbr.rel (%p439_p2) target bundleno = 2480 (0x9b0), region = 80  ;;  %p487_p3 = scmp.lt.s32.totalorder (!%p439_p2), %s1172_s22, 3 }
   0xb   : > { %v1290_v0 = vld [vmem:[%s1617_s1] sm:$0xff]  ;;  %s1633_s22 = smov (!%p487_p3, %s1172_s22), 3  ;;  %vm518_vm0 = vcmask 130048   ;;  %v1292_v2 = vld [vmem:[%s1619_s3 + $0x8] sm:$0xff]  ;;  %vm559_vm1 = vcmask 261120   ;;  %v1368_v21 = vmov 32.0  }
   0xc   : > { %529 = vmatpush.bf16.msra.mxu0 %v1290_v0  ;;  %s1173_s23 = sshll.u32 %s1633_s22, 2  ;;  %569 = vmatpush.bf16.msra.mxu1 %v1292_v2  ;;  %v1291_v3 = vld [vmem:[%s1619_s3] sm:$0xff]  ;;  %1334 = vrcp.f32 %v1368_v21  ;;  %v1294_v38 = vld [vmem:[%s1623_s7 + $0x8] sm:$0xff]  ;;  %vm719_vm9 = vcmask 523264   ;;  %s1175_s30 = sshll.u32 %s1633_s22, 3 }
   0xd   : > { %s490_s26 = scalar_lea.vmem %s1616_s0, %s1173_s23  ;;  %v1318_v5 = vld [vmem:[%s1618_s2] ss:$0 sm:$0xff]  ;;  %672 = vmatpush.bf16.msra.mxu2 %v1294_v38  ;;  %s496_s19 = scalar_lea.vmem %s1631_s15, %s1175_s30 }
   0xe   : > { %v1289_v1 = vld [vmem:[%s490_s26] sm:$0xff] }
   0xf   : > { %1184 = vmatmul.msk.bf16.vlgmr.msra.gmra.mxu0 %vm518_vm0, %v1289_v1  ;;  %v1319_v12 = vld [vmem:[%s1620_s4] ss:$0 sm:$0xff] }
  0x10   : > { %570 = vmatpush.bf16.msra.mxu1 %v1291_v3  ;;  %v1293_v40 = vld [vmem:[%s1623_s7] sm:$0xff] }
  0x11   : > { %673 = vmatpush.bf16.msra.mxu2 %v1293_v40  ;;  %v1320_v59 = vld [vmem:[%s1621_s5] ss:$0 sm:$0xff] }
  0x12   : > { %v1335_v22 = vpop.eup %1334  ;;  %v1321_v0 = vld [vmem:[%s1622_s6] ss:$0 sm:$0xff] }
  0x13   : > { %v588_v23 = vmul.f32 32.0, %v1335_v22  ;;  %vm592_vm2 = vweird.f32 %v1335_v22 }
  0x15   : > { %v589_v24 = vsub.f32 1.0, %v588_v23 }
  0x17   : > { %v590_v25 = vmul.f32 %v1335_v22, %v589_v24 }
  0x19   : > { %v591_v26 = vadd.f32 %v1335_v22, %v590_v25 }
  0x1b   : > { %v1481_v27 = vsel %vm592_vm2, %v1335_v22, %v591_v26 }
  0x8c   : > { %v531_v4 = vpop.f32.mrf.mxu0 }
  0x8d   : > { %v532_v6 = vadd.f32 %v1318_v5, %v531_v4 }
  0x8f   : > { %v536_v9 = vmax.f32 %v532_v6, 0.0  ;;  %v1297_v6 = vld [vmem:[%s1625_s9 + $0x10] sm:$0xff] }
  0x94   : > { %v533_v7 = vpop.f32.mrf.mxu0 }
  0x95   : > { %v534_v8 = vadd.f32 %v1318_v5, %v533_v7  ;;  %v1298_v5 = vld [vmem:[%s1625_s9 + $0x18] sm:$0xff]  ;;  %v1296_v7 = vld [vmem:[%s1625_s9 + $0x8] sm:$0xff] }
  0x96   : > { %727 = vmatpush.bf16.msra.mxu3 %v1298_v5 }
  0x97   : > { %v537_v10 = vmax.f32 %v534_v8, 0.0  ;;  %v1295_v8 = vld [vmem:[%s1625_s9] sm:$0xff] }
  0x99   : > { %v542_v11 = vpack.c.bf16 %v537_v10, %v536_v9 }
  0x9a   : > { %728 = vmatpush.bf16.msra.mxu3 %v1297_v6 }
  0x9b   : > { %1193 = vmatmul.msk.bf16.vlgmr.msra.gmra.mxu1 %vm559_vm1, %v542_v11 }
  0x9e   : > { %729 = vmatpush.bf16.msra.mxu3 %v1296_v7 }
  0xa2   : > { %730 = vmatpush.bf16.msra.mxu3 %v1295_v8 }
 0x118   : > { %v572_v13 = vpop.f32.mrf.mxu1 }
 0x119   : > { %v573_v14 = vadd.f32 %v1319_v12, %v572_v13 }
 0x11b   : > { %v577_v15 = vadd.f32 %v573_v14, %v536_v9 }
 0x11d   : > { %v581_v16 = vsel %vm559_vm1, %v577_v15, 0.0 }
 0x11e   : > { %582 = vadd.xlane.f32.xlu0 %v581_v16 }
 0x120   : > { %v574_v17 = vpop.f32.mrf.mxu1 }
 0x121   : > { %v575_v18 = vadd.f32 %v1319_v12, %v574_v17  ;;  %v1323_v17 = vld [vmem:[%s1626_s10] ss:$0 sm:$0xff] }
 0x123   : > { %v578_v19 = vadd.f32 %v575_v18, %v537_v10  ;;  %v1322_v10 = vld [vmem:[%s1624_s8] ss:$0 sm:$0xff] }
 0x125   : > { %v584_v20 = vsel %vm559_vm1, %v578_v19, 0.0 }
 0x126   : > { %585 = vadd.xlane.f32.xlu0 %v584_v20 }
 0x191   : > { %v583_v28 = vpop.xlane.xlu0 %582 }
 0x192   : > { %v594_v29 = vmul.f32 %v1481_v27, %v583_v28 }
 0x194   : > { %v596_v30 = vsub.f32 %v577_v15, %v594_v29 }
 0x196   : > { %v598_v31 = vmul.f32 %v596_v30, %v596_v30 }
 0x198   : > { %v600_v32 = vsel %vm559_vm1, %v598_v31, 0.0 }
 0x199   : > { %601 = vadd.xlane.f32.xlu1 %v600_v32  ;;  %v586_v33 = vpop.xlane.xlu0 %585 }
 0x19a   : > { %v595_v34 = vmul.f32 %v1481_v27, %v586_v33 }
 0x19c   : > { %v597_v35 = vsub.f32 %v578_v19, %v595_v34 }
 0x19e   : > { %v599_v36 = vmul.f32 %v597_v35, %v597_v35 }
 0x1a0   : > { %v603_v37 = vsel %vm559_vm1, %v599_v36, 0.0 }
 0x1a1   : > { %604 = vadd.xlane.f32.xlu1 %v603_v37  ;;  %v1300_v37 = vld [vmem:[%s1619_s3 + $0x18] sm:$0xff] }
 0x1a2   : > { %827 = vmatpush.bf16.msrb.mxu0 %v1300_v37 }
 0x20c   : > { %v602_v39 = vpop.xlane.xlu1 %601 }
 0x20d   : > { %v606_v41 = vmul.f32 %v602_v39, %v1481_v27  ;;  %v1299_v39 = vld [vmem:[%s1619_s3 + $0x10] sm:$0xff] }
 0x20e   : > { %828 = vmatpush.bf16.msrb.mxu0 %v1299_v39 }
 0x20f   : > { %v608_v42 = vadd.f32 1e-05, %v606_v41 }
 0x211   : > { %1336 = vrsqrt.f32 %v608_v42  ;;  %vm616_vm4 = vweird.f32 %v608_v42 }
 0x214   : > { %v605_v43 = vpop.xlane.xlu1 %604 }
 0x215   : > { %v607_v44 = vmul.f32 %v605_v43, %v1481_v27 }
 0x217   : > { %v1337_v45 = vpop.eup %1336  ;;  %v609_v46 = vadd.f32 1e-05, %v607_v44 }
 0x218   : > { %v611_v47 = vmul.f32 %v1337_v45, %v608_v42  ;;  %vm617_vm3 = vweird.f32 %v1337_v45 }
 0x219   : > { %1338 = vrsqrt.f32 %v609_v46  ;;  %vm618_vm5 = vmor %vm616_vm4, %vm617_vm3  ;;  %vm626_vm7 = vweird.f32 %v609_v46 }
 0x21a   : > { %v612_v48 = vmul.f32 %v1337_v45, %v611_v47 }
 0x21c   : > { %v613_v49 = vmul.f32 0.5, %v612_v48 }
 0x21e   : > { %v614_v50 = vsub.f32 1.5, %v613_v49 }
 0x21f   : > { %v1339_v51 = vpop.eup %1338 }
 0x220   : > { %v615_v52 = vmul.f32 %v1337_v45, %v614_v50  ;;  %v621_v53 = vmul.f32 %v1339_v51, %v609_v46  ;;  %vm627_vm6 = vweird.f32 %v1339_v51 }
 0x221   : > { %vm628_vm8 = vmor %vm626_vm7, %vm627_vm6 }
 0x222   : > { %v622_v54 = vmul.f32 %v1339_v51, %v621_v53  ;;  %v619_v55 = vsel %vm618_vm5, %v1337_v45, %v615_v52 }
 0x223   : > { %v630_v58 = vmul.f32 %v619_v55, %v596_v30 }
 0x224   : > { %v623_v56 = vmul.f32 0.5, %v622_v54 }
 0x225   : > { %v635_v63 = vmul.f32 %v1320_v59, %v630_v58  ;;  %v1324_v58 = vld [vmem:[%s1627_s11] ss:$0 sm:$0xff] }
 0x226   : > { %v624_v57 = vsub.f32 1.5, %v623_v56 }
 0x227   : > { %v640_v2 = vadd.f32 %v1321_v0, %v635_v63  ;;  %v1325_v63 = vld [vmem:[%s1628_s12] ss:$0 sm:$0xff] }
 0x228   : > { %v625_v60 = vmul.f32 %v1339_v51, %v624_v57 }
 0x22a   : > { %v629_v61 = vsel %vm628_vm8, %v1339_v51, %v625_v60 }
 0x22b   : > { %v631_v62 = vmul.f32 %v629_v61, %v597_v35 }
 0x22d   : > { %v636_v1 = vmul.f32 %v1320_v59, %v631_v62 }
 0x22f   : > { %v641_v3 = vadd.f32 %v1321_v0, %v636_v1 }
 0x231   : > { %v646_v4 = vpack.c.bf16 %v641_v3, %v640_v2 }
 0x233   : > { %1202 = vmatmul.msk.bf16.vlgmr.msra.gmra.mxu2 %vm559_vm1, %v646_v4  ;;  %v1326_v4 = vld [vmem:[%s1620_s4 + $0x1] ss:$0 sm:$0xff] }
 0x2b6   : > { %v675_v9 = vpop.f32.mrf.mxu2 }
 0x2b7   : > { %v676_v11 = vadd.f32 %v1322_v10, %v675_v9 }
 0x2b9   : > { %v680_v14 = vmax.f32 %v676_v11, 0.0 }
 0x2be   : > { %v677_v12 = vpop.f32.mrf.mxu2 }
 0x2bf   : > { %v678_v13 = vadd.f32 %v1322_v10, %v677_v12 }
 0x2c1   : > { %v681_v15 = vmax.f32 %v678_v13, 0.0 }
 0x2c3   : > { %v690_v16 = vpack.c.bf16 %v681_v15, %v680_v14 }
 0x2c5   : > { %1219 = vmatmul.msk.bf16.vlgmr.msra.gmra.mxu3 %vm719_vm9, %v690_v16 }
 0x348   : > { %v732_v18 = vpop.f32.mrf.mxu3 }
 0x349   : > { %v733_v19 = vadd.f32 %v1323_v17, %v732_v18 }
 0x34b   : > { %v737_v20 = vadd.f32 %v733_v19, %v640_v2 }
 0x34d   : > { %v741_v21 = vsel %vm559_vm1, %v737_v20, 0.0 }
 0x34e   : > { %742 = vadd.xlane.f32.xlu2 %v741_v21 }
 0x350   : > { %v734_v22 = vpop.f32.mrf.mxu3 }
 0x351   : > { %v735_v23 = vadd.f32 %v1323_v17, %v734_v22 }
 0x353   : > { %v738_v24 = vadd.f32 %v735_v23, %v641_v3  ;;  %v1302_v23 = vld [vmem:[%s1623_s7 + $0x18] sm:$0xff] }
 0x354   : > { %927 = vmatpush.bf16.msrb.mxu1 %v1302_v23 }
 0x355   : > { %v744_v25 = vsel %vm559_vm1, %v738_v24, 0.0 }
 0x356   : > { %745 = vadd.xlane.f32.xlu2 %v744_v25  ;;  %v1301_v25 = vld [vmem:[%s1623_s7 + $0x10] sm:$0xff] }
 0x358   : > { %928 = vmatpush.bf16.msrb.mxu1 %v1301_v25 }
 0x3c1   : > { %v743_v26 = vpop.xlane.xlu2 %742 }
 0x3c2   : > { %v747_v28 = vmul.f32 %v743_v26, %v1481_v27 }
 0x3c4   : > { %v749_v29 = vsub.f32 %v737_v20, %v747_v28 }
 0x3c6   : > { %v751_v30 = vmul.f32 %v749_v29, %v749_v29 }
 0x3c8   : > { %v753_v31 = vsel %vm559_vm1, %v751_v30, 0.0 }
 0x3c9   : > { %754 = vadd.xlane.f32.xlu0 %v753_v31  ;;  %v746_v32 = vpop.xlane.xlu2 %745 }
 0x3ca   : > { %v748_v33 = vmul.f32 %v746_v32, %v1481_v27 }
 0x3cc   : > { %v750_v34 = vsub.f32 %v738_v24, %v748_v33 }
 0x3ce   : > { %v752_v35 = vmul.f32 %v750_v34, %v750_v34 }
 0x3d0   : > { %v756_v36 = vsel %vm559_vm1, %v752_v35, 0.0 }
 0x3d1   : > { %757 = vadd.xlane.f32.xlu1 %v756_v36 }
 0x43c   : > { %v755_v38 = vpop.xlane.xlu0 %754 }
 0x43d   : > { %v759_v40 = vmul.f32 %v755_v38, %v1481_v27 }
 0x43f   : > { %v761_v41 = vadd.f32 1e-05, %v759_v40 }
 0x441   : > { %1340 = vrsqrt.f32 %v761_v41  ;;  %vm769_vm11 = vweird.f32 %v761_v41 }
 0x444   : > { %v758_v42 = vpop.xlane.xlu1 %757 }
 0x445   : > { %v760_v43 = vmul.f32 %v758_v42, %v1481_v27 }
 0x447   : > { %v1341_v44 = vpop.eup %1340  ;;  %v762_v45 = vadd.f32 1e-05, %v760_v43 }
 0x448   : > { %v764_v46 = vmul.f32 %v1341_v44, %v761_v41  ;;  %vm770_vm10 = vweird.f32 %v1341_v44 }
 0x449   : > { %1342 = vrsqrt.f32 %v762_v45  ;;  %vm771_vm12 = vmor %vm769_vm11, %vm770_vm10  ;;  %vm779_vm14 = vweird.f32 %v762_v45 }
 0x44a   : > { %v765_v47 = vmul.f32 %v1341_v44, %v764_v46  ;;  %v1327_v46 = vld [vmem:[%s1621_s5 + $0x1] ss:$0 sm:$0xff] }
 0x44c   : > { %v766_v48 = vmul.f32 0.5, %v765_v47 }
 0x44e   : > { %v767_v49 = vsub.f32 1.5, %v766_v48 }
 0x44f   : > { %v1343_v50 = vpop.eup %1342 }
 0x450   : > { %v768_v51 = vmul.f32 %v1341_v44, %v767_v49  ;;  %v774_v52 = vmul.f32 %v1343_v50, %v762_v45  ;;  %vm780_vm13 = vweird.f32 %v1343_v50 }
 0x451   : > { %vm781_vm15 = vmor %vm779_vm14, %vm780_vm13 }
 0x452   : > { %v775_v53 = vmul.f32 %v1343_v50, %v774_v52  ;;  %v772_v54 = vsel %vm771_vm12, %v1341_v44, %v768_v51  ;;  %v1328_v51 = vld [vmem:[%s1622_s6 + $0x1] ss:$0 sm:$0xff] }
 0x453   : > { %v783_v57 = vmul.f32 %v772_v54, %v749_v29  ;;  %v1306_v29 = vld [vmem:[%s1625_s9 + $0x38] sm:$0xff] }
 0x454   : > { %v776_v55 = vmul.f32 0.5, %v775_v53  ;;  %983 = vmatpush.bf16.msrb.mxu2 %v1306_v29 }
 0x455   : > { %v788_v62 = vmul.f32 %v1324_v58, %v783_v57  ;;  %v1304_v57 = vld [vmem:[%s1625_s9 + $0x28] sm:$0xff] }
 0x456   : > { %v777_v56 = vsub.f32 1.5, %v776_v55 }
 0x457   : > { %v793_v1 = vadd.f32 %v1325_v63, %v788_v62 }
 0x458   : > { %v778_v59 = vmul.f32 %v1343_v50, %v777_v56  ;;  %v1305_v56 = vld [vmem:[%s1625_s9 + $0x30] sm:$0xff] }
 0x459   : > { %984 = vmatpush.bf16.msrb.mxu2 %v1305_v56 }
 0x45a   : > { %v782_v60 = vsel %vm781_vm15, %v1343_v50, %v778_v59 }
 0x45b   : > { %v784_v61 = vmul.f32 %v782_v60, %v750_v34  ;;  %v1329_v60 = vld [vmem:[%s1624_s8 + $0x1] ss:$0 sm:$0xff] }
 0x45d   : > { %v789_v0 = vmul.f32 %v1324_v58, %v784_v61  ;;  %985 = vmatpush.bf16.msrb.mxu2 %v1304_v57  ;;  %v1303_v58 = vld [vmem:[%s1625_s9 + $0x20] sm:$0xff] }
 0x45f   : > { %v794_v2 = vadd.f32 %v1325_v63, %v789_v0 }
 0x461   : > { %v800_v3 = vpack.c.bf16 %v794_v2, %v793_v1  ;;  %986 = vmatpush.bf16.msrb.mxu2 %v1303_v58 }
 0x463   : > { %1233 = vmatmul.msk.bf16.vlgmr.msrb.gmra.mxu0 %vm559_vm1, %v800_v3  ;;  %v1330_v3 = vld [vmem:[%s1626_s10 + $0x1] ss:$0 sm:$0xff] }
 0x4e0   : > { %v830_v5 = vpop.f32.mrf.mxu0 }
 0x4e1   : > { %v831_v6 = vadd.f32 %v1326_v4, %v830_v5 }
 0x4e3   : > { %v835_v7 = vadd.f32 %v831_v6, %v793_v1 }
 0x4e5   : > { %v841_v8 = vsel %vm559_vm1, %v835_v7, 0.0 }
 0x4e6   : > { %842 = vadd.xlane.f32.xlu2 %v841_v8 }
 0x4e8   : > { %v832_v9 = vpop.f32.mrf.mxu0 }
 0x4e9   : > { %v833_v10 = vadd.f32 %v1326_v4, %v832_v9 }
 0x4eb   : > { %v836_v11 = vadd.f32 %v833_v10, %v794_v2 }
 0x4ed   : > { %v844_v12 = vsel %vm559_vm1, %v836_v11, 0.0 }
 0x4ee   : > { %845 = vadd.xlane.f32.xlu0 %v844_v12 }
 0x559   : > { %v843_v13 = vpop.xlane.xlu2 %842 }
 0x55a   : > { %v847_v14 = vmul.f32 %v843_v13, %v1481_v27 }
 0x55c   : > { %v849_v15 = vsub.f32 %v835_v7, %v847_v14 }
 0x55e   : > { %v851_v16 = vmul.f32 %v849_v15, %v849_v15 }
 0x560   : > { %v853_v17 = vsel %vm559_vm1, %v851_v16, 0.0 }
 0x561   : > { %v846_v18 = vpop.xlane.xlu0 %845  ;;  %854 = vadd.xlane.f32.xlu1 %v853_v17 }
 0x562   : > { %v848_v19 = vmul.f32 %v846_v18, %v1481_v27 }
 0x564   : > { %v850_v20 = vsub.f32 %v836_v11, %v848_v19 }
 0x566   : > { %v852_v21 = vmul.f32 %v850_v20, %v850_v20 }
 0x568   : > { %v856_v22 = vsel %vm559_vm1, %v852_v21, 0.0 }
 0x569   : > { %857 = vadd.xlane.f32.xlu2 %v856_v22  ;;  %v1308_v22 = vld [vmem:[%s1629_s13 + $0x8] sm:$0xff] }
 0x56a   : > { %1083 = vmatpush.bf16.msrb.mxu3 %v1308_v22 }
 0x5d4   : > { %v855_v24 = vpop.xlane.xlu1 %854 }
 0x5d5   : > { %v859_v26 = vmul.f32 %v855_v24, %v1481_v27  ;;  %v1307_v24 = vld [vmem:[%s1629_s13] sm:$0xff] }
 0x5d6   : > { %1084 = vmatpush.bf16.msrb.mxu3 %v1307_v24 }
 0x5d7   : > { %v861_v28 = vadd.f32 1e-05, %v859_v26 }
 0x5d9   : > { %1344 = vrsqrt.f32 %v861_v28  ;;  %vm869_vm2 = vweird.f32 %v861_v28 }
 0x5dc   : > { %v858_v30 = vpop.xlane.xlu2 %857 }
 0x5dd   : > { %v860_v31 = vmul.f32 %v858_v30, %v1481_v27 }
 0x5df   : > { %v1345_v32 = vpop.eup %1344  ;;  %v862_v33 = vadd.f32 1e-05, %v860_v31 }
 0x5e0   : > { %v864_v34 = vmul.f32 %v1345_v32, %v861_v28  ;;  %vm870_vm0 = vweird.f32 %v1345_v32 }
 0x5e1   : > { %1346 = vrsqrt.f32 %v862_v33  ;;  %vm871_vm3 = vmor %vm869_vm2, %vm870_vm0  ;;  %vm879_vm5 = vweird.f32 %v862_v33 }
 0x5e2   : > { %v865_v35 = vmul.f32 %v1345_v32, %v864_v34 }
 0x5e4   : > { %v866_v36 = vmul.f32 0.5, %v865_v35 }
 0x5e6   : > { %v867_v37 = vsub.f32 1.5, %v866_v36 }
 0x5e7   : > { %v1347_v38 = vpop.eup %1346 }
 0x5e8   : > { %v868_v39 = vmul.f32 %v1345_v32, %v867_v37  ;;  %v874_v40 = vmul.f32 %v1347_v38, %v862_v33  ;;  %vm880_vm4 = vweird.f32 %v1347_v38 }
 0x5e9   : > { %vm881_vm6 = vmor %vm879_vm5, %vm880_vm4 }
 0x5ea   : > { %v875_v41 = vmul.f32 %v1347_v38, %v874_v40  ;;  %v872_v42 = vsel %vm871_vm3, %v1345_v32, %v868_v39 }
 0x5eb   : > { %v883_v45 = vmul.f32 %v872_v42, %v849_v15 }
 0x5ec   : > { %v876_v43 = vmul.f32 0.5, %v875_v41 }
 0x5ed   : > { %v888_v50 = vmul.f32 %v1327_v46, %v883_v45 }
 0x5ee   : > { %v877_v44 = vsub.f32 1.5, %v876_v43 }
 0x5ef   : > { %v893_v53 = vadd.f32 %v1328_v51, %v888_v50 }
 0x5f0   : > { %v878_v47 = vmul.f32 %v1347_v38, %v877_v44 }
 0x5f2   : > { %v882_v48 = vsel %vm881_vm6, %v1347_v38, %v878_v47 }
 0x5f3   : > { %v884_v49 = vmul.f32 %v882_v48, %v850_v20  ;;  %v1332_v48 = vld [vmem:[%s1628_s12 + $0x1] ss:$0 sm:$0xff] }
 0x5f5   : > { %v889_v52 = vmul.f32 %v1327_v46, %v884_v49 }
 0x5f7   : > { %v894_v54 = vadd.f32 %v1328_v51, %v889_v52 }
 0x5f9   : > { %v900_v55 = vpack.c.bf16 %v894_v54, %v893_v53 }
 0x5fb   : > { %1249 = vmatmul.msk.bf16.vlgmr.msrb.gmra.mxu1 %vm559_vm1, %v900_v55 }
 0x678   : > { %v930_v59 = vpop.f32.mrf.mxu1 }
 0x679   : > { %v931_v61 = vadd.f32 %v1329_v60, %v930_v59 }
 0x67b   : > { %v935_v0 = vmax.f32 %v931_v61, 0.0 }
 0x680   : > { %v932_v62 = vpop.f32.mrf.mxu1 }
 0x681   : > { %v933_v63 = vadd.f32 %v1329_v60, %v932_v62 }
 0x683   : > { %v936_v1 = vmax.f32 %v933_v63, 0.0 }
 0x685   : > { %v946_v2 = vpack.c.bf16 %v936_v1, %v935_v0 }
 0x687   : > { %1275 = vmatmul.msk.bf16.vlgmr.msrb.gmra.mxu2 %vm719_vm9, %v946_v2 }
 0x70a   : > { %v988_v4 = vpop.f32.mrf.mxu2 }
 0x70b   : > { %v989_v5 = vadd.f32 %v1330_v3, %v988_v4 }
 0x70d   : > { %v993_v6 = vadd.f32 %v989_v5, %v893_v53  ;;  %v1333_v53 = vld [vmem:[%s1630_s14] ss:$0 sm:$0xff] }
 0x70f   : > { %v999_v7 = vsel %vm559_vm1, %v993_v6, 0.0 }
 0x710   : > { %1000 = vadd.xlane.f32.xlu0 %v999_v7 }
 0x712   : > { %v990_v8 = vpop.f32.mrf.mxu2 }
 0x713   : > { %v991_v9 = vadd.f32 %v1330_v3, %v990_v8 }
 0x715   : > { %v994_v10 = vadd.f32 %v991_v9, %v894_v54 }
 0x717   : > { %v1002_v11 = vsel %vm559_vm1, %v994_v10, 0.0 }
 0x718   : > { %1003 = vadd.xlane.f32.xlu1 %v1002_v11 }
 0x783   : > { %v1001_v12 = vpop.xlane.xlu0 %1000 }
 0x784   : > { %v1005_v13 = vmul.f32 %v1001_v12, %v1481_v27 }
 0x786   : > { %v1007_v14 = vsub.f32 %v993_v6, %v1005_v13 }
 0x788   : > { %v1009_v15 = vmul.f32 %v1007_v14, %v1007_v14 }
 0x78a   : > { %v1011_v16 = vsel %vm559_vm1, %v1009_v15, 0.0 }
 0x78b   : > { %v1004_v17 = vpop.xlane.xlu1 %1003  ;;  %1012 = vadd.xlane.f32.xlu2 %v1011_v16 }
 0x78c   : > { %v1006_v18 = vmul.f32 %v1004_v17, %v1481_v27 }
 0x78e   : > { %v1008_v19 = vsub.f32 %v994_v10, %v1006_v18 }
 0x790   : > { %v1010_v20 = vmul.f32 %v1008_v19, %v1008_v19 }
 0x792   : > { %v1014_v21 = vsel %vm559_vm1, %v1010_v20, 0.0 }
 0x793   : > { %1015 = vadd.xlane.f32.xlu0 %v1014_v21 }
 0x7fe   : > { %v1013_v23 = vpop.xlane.xlu2 %1012 }
 0x7ff   : > { %v1017_v25 = vmul.f32 %v1013_v23, %v1481_v27 }
 0x801   : > { %v1019_v26 = vadd.f32 1e-05, %v1017_v25 }
 0x803   : > { %1348 = vrsqrt.f32 %v1019_v26  ;;  %vm1027_vm8 = vweird.f32 %v1019_v26 }
 0x806   : > { %v1016_v28 = vpop.xlane.xlu0 %1015 }
 0x807   : > { %v1018_v29 = vmul.f32 %v1016_v28, %v1481_v27  ;;  %v1331_v27 = vld [vmem:[%s1627_s11 + $0x1] ss:$0 sm:$0xff] }
 0x809   : > { %v1349_v30 = vpop.eup %1348  ;;  %v1020_v31 = vadd.f32 1e-05, %v1018_v29 }
 0x80a   : > { %v1022_v32 = vmul.f32 %v1349_v30, %v1019_v26  ;;  %vm1028_vm7 = vweird.f32 %v1349_v30 }
 0x80b   : > { %1350 = vrsqrt.f32 %v1020_v31  ;;  %vm1029_vm9 = vmor %vm1027_vm8, %vm1028_vm7  ;;  %vm1037_vm11 = vweird.f32 %v1020_v31 }
 0x80c   : > { %v1023_v33 = vmul.f32 %v1349_v30, %v1022_v32 }
 0x80e   : > { %v1024_v34 = vmul.f32 0.5, %v1023_v33 }
 0x810   : > { %v1025_v35 = vsub.f32 1.5, %v1024_v34 }
 0x811   : > { %v1351_v36 = vpop.eup %1350 }
 0x812   : > { %v1026_v37 = vmul.f32 %v1349_v30, %v1025_v35  ;;  %v1032_v38 = vmul.f32 %v1351_v36, %v1020_v31  ;;  %vm1038_vm10 = vweird.f32 %v1351_v36 }
 0x813   : > { %vm1039_vm12 = vmor %vm1037_vm11, %vm1038_vm10 }
 0x814   : > { %v1033_v39 = vmul.f32 %v1351_v36, %v1032_v38  ;;  %v1030_v40 = vsel %vm1029_vm9, %v1349_v30, %v1026_v37 }
 0x815   : > { %v1041_v43 = vmul.f32 %v1030_v40, %v1007_v14 }
 0x816   : > { %v1034_v41 = vmul.f32 0.5, %v1033_v39 }
 0x817   : > { %v1046_v47 = vmul.f32 %v1331_v27, %v1041_v43 }
 0x818   : > { %v1035_v42 = vsub.f32 1.5, %v1034_v41 }
 0x819   : > { %v1051_v50 = vadd.f32 %v1332_v48, %v1046_v47 }
 0x81a   : > { %v1036_v44 = vmul.f32 %v1351_v36, %v1035_v42 }
 0x81c   : > { %v1040_v45 = vsel %vm1039_vm12, %v1351_v36, %v1036_v44 }
 0x81d   : > { %v1042_v46 = vmul.f32 %v1040_v45, %v1008_v19 }
 0x81f   : > { %v1047_v49 = vmul.f32 %v1331_v27, %v1042_v46 }
 0x821   : > { %v1052_v51 = vadd.f32 %v1332_v48, %v1047_v49 }
 0x823   : > { %v1057_v52 = vpack.c.bf16 %v1052_v51, %v1051_v50 }
 0x825   : > { %1286 = vmatmul.msk.bf16.vlgmr.msrb.gmra.mxu3 %vm559_vm1, %v1057_v52 }
 0x8a8   : > { %v1086_v54 = vpop.f32.mrf.mxu3 }
 0x8a9   : > { %v1087_v55 = vadd.f32 %v1333_v53, %v1086_v54 }
 0x8ab   : > { %1091 = vmax.xlane.f32.xlu1 %v1087_v55 }
 0x8b0   : > { %v1088_v56 = vpop.f32.mrf.mxu3 }
 0x8b1   : > { %v1089_v57 = vadd.f32 %v1333_v53, %v1088_v56 }
 0x8b3   : > { %1093 = vmax.xlane.f32.xlu2 %v1089_v57 }
 0x91e   : > { %v1092_v58 = vpop.xlane.xlu1 %1091 }
 0x91f   : > { %v1095_v59 = vsub.f32 %v1087_v55, %v1092_v58 }
 0x921   : > { %v1097_v60 = vmul.f32 1.442695, %v1095_v59 }
 0x923   : > { %1352 = vpow2.f32 %v1097_v60 }
 0x926   : > { %v1094_v61 = vpop.xlane.xlu2 %1093 }
 0x927   : > { %v1096_v62 = vsub.f32 %v1089_v57, %v1094_v61 }
 0x929   : > { %v1353_v63 = vpop.eup %1352  ;;  %v1099_v0 = vmul.f32 1.442695, %v1096_v62 }
 0x92a   : > { %1101 = vadd.xlane.f32.xlu0 %v1353_v63 }
 0x92b   : > { %1354 = vpow2.f32 %v1099_v0 }
 0x931   : > { %v1355_v1 = vpop.eup %1354 }
 0x932   : > { %1103 = vadd.xlane.f32.xlu1 %v1355_v1 }
 0x99d   : > { %v1102_v2 = vpop.xlane.xlu0 %1101 }
 0x99e   : > { %1356 = vrcp.f32 %v1102_v2 }
 0x9a4   : > { %v1357_v3 = vpop.eup %1356 }
 0x9a5   : > { %v1107_v4 = vmul.f32 %v1357_v3, %v1353_v63  ;;  %v1104_v5 = vpop.xlane.xlu1 %1103 }
 0x9a6   : > { %1358 = vrcp.f32 %v1104_v5 }
 0x9a7   : > { %1109 = vst [vmem:[%s496_s19] sm:$0xff] %v1107_v4 }
 0x9ac   : > { %v1359_v6 = vpop.eup %1358 }
 0x9ad   : > { %v1108_v7 = vmul.f32 %v1359_v6, %v1355_v1 }
 0x9af   : > { %1110 = vst [vmem:[%s496_s19 + $0x8] sm:$0xff] %v1108_v7 }
 0x9b0 PF: > { %s25_s18 = sadd.s32 1, %s1366_s18  }
 0x9b1   : > { %p22_p4 = scmp.ge.s32.totalorder %s25_s18, 4  }
 0x9b3   :  { %24 = sbr.rel (!%p22_p4) target bundleno = 1 (0x1), region = 120 }

</bundles_post_ra>
